<compile_context>
chip_gen: v7x
topology: tpu7x:2x2x1
jax: 0.10.0
libtpu: 0.0.40
codegen_flags: <defaults>
</compile_context>

<pallas_src>
import functools

import jax
import jax.numpy as jnp
from jax.experimental import pallas as pl
from jax.experimental.pallas import tpu as pltpu


def _pick_spatial_tile(hw_pad):
    """Largest lane-dense spatial tile (<=512) dividing the padded H*W."""
    for t in (512, 256, 128):
        if hw_pad % t == 0:
            return t
    return hw_pad  # unreachable: hw_pad is always a multiple of 128


def _pick_cout_tile(cout):
    """Cout tile: bounds the (tc, thw) output / accumulator VMEM footprint."""
    for t in (256, 128):
        if cout % t == 0:
            return t
    return cout


def _vmem_limit(estimate_bytes):
    """Explicit scoped-VMEM limit (the v5e default is only 16 MiB)."""
    return int(min(96 * 1024 * 1024, max(32 * 1024 * 1024, 2 * estimate_bytes)))


# ----------------------------------------------------------------------------
# Kernel 1: DropBlock mask + rescale factor (gridded over batch)
#   m = (u < gamma), separable stride-1 max-pool (k=block_size, pad=k//2),
#   block_mask = 1 - pooled ; scale = numel / max(sum(block_mask), 1)
# ----------------------------------------------------------------------------
def _dropblock_mask_kernel(u_ref, bm_ref, scale_ref, acc_ref, *, gamma,
                           block_size, n, h, w):
    i = pl.program_id(0)

    @pl.when(i == 0)
    def _():
        acc_ref[0] = jnp.float32(0.0)

    # Bernoulli(gamma): the padded border of u holds 2.0 (>= any gamma) -> 0.
    m = (u_ref[...] < gamma).astype(jnp.float32)          # (1, h+2p, w+2p)

    # Separable max-pool.  Taking output rows/cols [0, h) x [0, w) also
    # reproduces the reference's [:-1, :-1] trim for even block_size.
    hmax = m[:, :, 0:w]
    for dx in range(1, block_size):
        hmax = jnp.maximum(hmax, m[:, :, dx:dx + w])
    pooled = hmax[:, 0:h, :]
    for dy in range(1, block_size):
        pooled = jnp.maximum(pooled, hmax[:, dy:dy + h, :])

    bm = 1.0 - pooled                                     # 1 = keep layer4(x)
    bm_ref[...] = bm.astype(bm_ref.dtype)
    acc_ref[0] += jnp.sum(bm)

    @pl.when(i == pl.num_programs(0) - 1)
    def _():
        numel = jnp.float32(n * h * w)
        scale_ref[0] = numel / jnp.maximum(acc_ref[0], jnp.float32(1.0))


def dropblock_mask(u_pad, gamma, block_size, n, h, w):
    """Returns block_mask (n, h, w) bf16 and scale (1,) f32."""
    hp, wp = u_pad.shape[1], u_pad.shape[2]
    return pl.pallas_call(
        functools.partial(_dropblock_mask_kernel, gamma=gamma,
                          block_size=block_size, n=n, h=h, w=w),
        out_shape=(jax.ShapeDtypeStruct((n, h, w), jnp.bfloat16),
                   jax.ShapeDtypeStruct((1,), jnp.float32)),
        grid=(n,),
        in_specs=[pl.BlockSpec((1, hp, wp), lambda i: (i, 0, 0))],
        out_specs=(pl.BlockSpec((1, h, w), lambda i: (i, 0, 0)),
                   pl.BlockSpec(memory_space=pltpu.MemorySpace.SMEM)),
        scratch_shapes=[pltpu.SMEM((1,), jnp.float32)],
        compiler_params=pltpu.CompilerParams(
            dimension_semantics=("arbitrary",)),
    )(u_pad)


# ----------------------------------------------------------------------------
# Kernel 2: fused dual 1x1-conv + DropBlock blend + rescale (training path)
# ----------------------------------------------------------------------------
def _fused_conv_blend_kernel(scale_ref, x_ref, w4_ref, wp_ref, b4_ref, bp_ref,
                             bm_ref, o_ref):
    x = x_ref[0]                                                  # (Cin, thw)
    y = jnp.dot(w4_ref[...], x, preferred_element_type=jnp.float32) + b4_ref[...]
    o4 = jnp.dot(wp_ref[...], x, preferred_element_type=jnp.float32) + bp_ref[...]
    keep = bm_ref[0] > 0.5                                        # (1, thw)
    o_ref[0] = (jnp.where(keep, y, o4) * scale_ref[0]).astype(o_ref.dtype)


def fused_conv_blend(scale, x3, w4, wpre, b4, bpre, bm3, out_dtype):
    n, cin, hw_pad = x3.shape
    cout = w4.shape[0]
    thw = _pick_spatial_tile(hw_pad)
    tc = _pick_cout_tile(cout)
    csz = jnp.dtype(x3.dtype).itemsize
    osz = jnp.dtype(out_dtype).itemsize
    est = (2 * cin * thw * csz                # double-buffered x tile
           + 2 * tc * cin * csz               # two weight tiles (single-buffered)
           + 2 * thw * jnp.dtype(bm3.dtype).itemsize
           + 2 * tc * thw * osz               # double-buffered output tile
           + 4 * tc * thw * 4)                # in-kernel f32 temporaries
    # Weight grid axis outermost so the single-buffered weights are refetched
    # only cout/tc times while x / mask stream through the inner axes.
    return pl.pallas_call(
        _fused_conv_blend_kernel,
        out_shape=jax.ShapeDtypeStruct((n, cout, hw_pad), out_dtype),
        grid=(cout // tc, n, hw_pad // thw),
        in_specs=[
            pl.BlockSpec(memory_space=pltpu.MemorySpace.SMEM),           # scale
            pl.BlockSpec((1, cin, thw), lambda c, i, j: (i, 0, j)),      # x
            pl.BlockSpec((tc, cin), lambda c, i, j: (c, 0),
                         pipeline_mode=pl.Buffered(1)),                  # w layer4
            pl.BlockSpec((tc, cin), lambda c, i, j: (c, 0),
                         pipeline_mode=pl.Buffered(1)),                  # w premodel
            pl.BlockSpec((tc, 1), lambda c, i, j: (c, 0),
                         pipeline_mode=pl.Buffered(1)),                  # b layer4
            pl.BlockSpec((tc, 1), lambda c, i, j: (c, 0),
                         pipeline_mode=pl.Buffered(1)),                  # b premodel
            pl.BlockSpec((1, 1, thw), lambda c, i, j: (i, 0, j)),        # block mask
        ],
        out_specs=pl.BlockSpec((1, tc, thw), lambda c, i, j: (i, c, j)),
        compiler_params=pltpu.CompilerParams(
            dimension_semantics=("parallel", "parallel", "parallel"),
            vmem_limit_bytes=_vmem_limit(est)),
    )(scale, x3, w4, wpre, b4, bpre, bm3)


# ----------------------------------------------------------------------------
# Kernel 3: single 1x1 conv (eval / drop_prob == 0 path)
# ----------------------------------------------------------------------------
def _conv_kernel(x_ref, w_ref, b_ref, o_ref):
    acc = jnp.dot(w_ref[...], x_ref[0], preferred_element_type=jnp.float32)
    o_ref[0] = (acc + b_ref[...]).astype(o_ref.dtype)


def pointwise_conv(x3, wt, b, out_dtype):
    n, cin, hw_pad = x3.shape
    cout = wt.shape[0]
    thw = _pick_spatial_tile(hw_pad)
    tc = _pick_cout_tile(cout)
    csz = jnp.dtype(x3.dtype).itemsize
    osz = jnp.dtype(out_dtype).itemsize
    est = 2 * cin * thw * csz + tc * cin * csz + 2 * tc * thw * osz + 2 * tc * thw * 4
    return pl.pallas_call(
        _conv_kernel,
        out_shape=jax.ShapeDtypeStruct((n, cout, hw_pad), out_dtype),
        grid=(cout // tc, n, hw_pad // thw),
        in_specs=[
            pl.BlockSpec((1, cin, thw), lambda c, i, j: (i, 0, j)),
            pl.BlockSpec((tc, cin), lambda c, i, j: (c, 0),
                         pipeline_mode=pl.Buffered(1)),
            pl.BlockSpec((tc, 1), lambda c, i, j: (c, 0),
                         pipeline_mode=pl.Buffered(1)),
        ],
        out_specs=pl.BlockSpec((1, tc, thw), lambda c, i, j: (i, c, j)),
        compiler_params=pltpu.CompilerParams(
            dimension_semantics=("parallel", "parallel", "parallel"),
            vmem_limit_bytes=_vmem_limit(est)),
    )(x3, wt, b)


# ----------------------------------------------------------------------------
# Module forward
# ----------------------------------------------------------------------------
def trans_block_layer4(x, params, *, drop_prob, block_size, rng_key=None,
                       training=True, compute_dtype=jnp.bfloat16):
    """Forward pass of transBlocklayer4.  x: (N, Cin, H, W) NCHW."""
    assert x.ndim == 4, \
        "Expected input with 4 dimensions (bsize, channels, height, width)"
    n, cin, h, w = x.shape
    cout = params["w_layer4"].shape[1]
    out_dtype = x.dtype
    hw = h * w
    hw_pad = ((hw + 127) // 128) * 128          # keep the lane axis dense

    # Free (contiguous) reshape: channels on sublanes, H*W on the lane axis.
    x3 = x.reshape(n, cin, hw).astype(compute_dtype)
    if hw_pad != hw:
        # TODO(synk): for hw < 128 (e.g. 7x7 layer4 maps) this pads lanes; a
        # channels-on-lanes layout would avoid the waste.
        x3 = jnp.pad(x3, ((0, 0), (0, 0), (0, hw_pad - hw)))

    w_l4 = params["w_layer4"].T.astype(compute_dtype)              # (Cout, Cin)
    b_l4 = params["b_layer4"].astype(jnp.float32).reshape(cout, 1)

    if (not training) or drop_prob == 0.0:
        y3 = pointwise_conv(x3, w_l4, b_l4, out_dtype)
        return y3[:, :, :hw].reshape(n, cout, h, w)

    assert rng_key is not None, "rng_key is required in training mode"
    gamma = float(drop_prob) / float(block_size ** 2)
    p = block_size // 2
    # Host-side uniforms (the in-kernel TPU PRNG has no interpret/CPU lowering);
    # the padded border is filled with 2.0 so it never fires the Bernoulli mask.
    u = jax.random.uniform(rng_key, (n, h, w), dtype=jnp.float32)
    u_pad = jnp.pad(u, ((0, 0), (p, p), (p, p)), constant_values=2.0)
    block_mask, scale = dropblock_mask(u_pad, gamma, block_size, n, h, w)

    bm3 = block_mask.reshape(n, 1, hw)
    if hw_pad != hw:
        bm3 = jnp.pad(bm3, ((0, 0), (0, 0), (0, hw_pad - hw)))

    w_pre = params["w_pre"].T.astype(compute_dtype)
    b_pre = params["b_pre"].astype(jnp.float32).reshape(cout, 1)

    # TODO(synk): the reference's nested numpy blend loop is ill-formed (it
    # unpacks a 3-D mask slice as 4-D); we implement the intended DropBlock
    # blend: keep layer4(x) where block_mask==1, substitute premodel.layer4(x)
    # elsewhere, then rescale by numel / sum(block_mask).
    # TODO(synk): `layer4` / `premodel.layer4` are unspecified submodules; they
    # are modeled as pointwise (1x1) convolutions Cin -> Cout.
    out3 = fused_conv_blend(scale, x3, w_l4, w_pre, b_l4, b_pre, bm3, out_dtype)
    return out3[:, :, :hw].reshape(n, cout, h, w)


# ----------------------------------------------------------------------------
# Pure-JAX reference (for correctness checks only)
# ----------------------------------------------------------------------------
def _conv_ref(x, wmat, bias, compute_dtype):
    xr = x.astype(compute_dtype).astype(jnp.float32)
    wr = wmat.astype(compute_dtype).astype(jnp.float32)
    return jnp.einsum("nchw,cd->ndhw", xr, wr) + bias[None, :, None, None]


def _reference_forward(x, params, *, drop_prob, block_size, rng_key, training,
                       compute_dtype=jnp.bfloat16):
    n, cin, h, w = x.shape
    y = _conv_ref(x, params["w_layer4"], params["b_layer4"], compute_dtype)
    if (not training) or drop_prob == 0.0:
        return y.astype(x.dtype)
    o4 = _conv_ref(x, params["w_pre"], params["b_pre"], compute_dtype)
    gamma = drop_prob / block_size ** 2
    u = jax.random.uniform(rng_key, (n, h, w), dtype=jnp.float32)
    m = (u < gamma).astype(jnp.float32)
    p = block_size // 2
    pooled = jax.lax.reduce_window(m, -jnp.inf, jax.lax.max,
                                   (1, block_size, block_size), (1, 1, 1),
                                   [(0, 0), (p, p), (p, p)])
    pooled = pooled[:, :h, :w]              # reference trim for even block_size
    bm = 1.0 - pooled
    scale = (n * h * w) / jnp.maximum(jnp.sum(bm), 1.0)
    out = jnp.where(bm[:, None, :, :] > 0.5, y, o4) * scale
    return out.astype(x.dtype)


if __name__ == "__main__":
    N, Cin, H, W = 2, 4, 16, 16
    Cout = 8

    k0 = jax.random.PRNGKey(0)
    kx, k1, k2, k3, k4, kd = jax.random.split(k0, 6)
    x = jax.random.normal(kx, (N, Cin, H, W), dtype=jnp.float32)
    params = {
        "w_layer4": 0.1 * jax.random.normal(k1, (Cin, Cout), dtype=jnp.float32),
        "b_layer4": 0.01 * jax.random.normal(k2, (Cout,), dtype=jnp.float32),
        "w_pre": 0.1 * jax.random.normal(k3, (Cin, Cout), dtype=jnp.float32),
        "b_pre": 0.01 * jax.random.normal(k4, (Cout,), dtype=jnp.float32),
    }

    # Eval path (plain layer4 conv).
    out_eval = trans_block_layer4(x, params, drop_prob=0.1, block_size=3,
                                  rng_key=kd, training=False)
    jax.block_until_ready(out_eval)
    ref_eval = _reference_forward(x, params, drop_prob=0.1, block_size=3,
                                  rng_key=kd, training=False)
    assert out_eval.shape == (N, Cout, H, W) and out_eval.dtype == x.dtype
    assert jnp.allclose(out_eval, ref_eval, atol=5e-3, rtol=5e-3)

    # Training path (DropBlock active), odd and even block sizes.
    for bs in (3, 4):
        out_tr = trans_block_layer4(x, params, drop_prob=0.2, block_size=bs,
                                    rng_key=kd, training=True)
        jax.block_until_ready(out_tr)
        assert out_tr.shape == (N, Cout, H, W) and out_tr.dtype == x.dtype
        assert bool(jnp.all(jnp.isfinite(out_tr)))
        ref_tr = _reference_forward(x, params, drop_prob=0.2, block_size=bs,
                                    rng_key=kd, training=True)
        assert jnp.allclose(out_tr, ref_tr, atol=5e-3, rtol=5e-3)

    print("KERNEL_OK")
</pallas_src>

<mosaic_0001>
module attributes {stable_mosaic.version = 11 : i64} {
  func.func @_conv_kernel(%arg0: i32, %arg1: i32, %arg2: i32, %arg3: memref<1x4x256xbf16, #tpu.memory_space<vmem>>, %arg4: memref<8x4xbf16, #tpu.memory_space<vmem>>, %arg5: memref<8x1xf32, #tpu.memory_space<vmem>>, %arg6: memref<1x8x256xf32, #tpu.memory_space<vmem>>) attributes {dimension_semantics = [#tpu.dimension_semantics<parallel>, #tpu.dimension_semantics<parallel>, #tpu.dimension_semantics<parallel>], iteration_bounds = array<i64: 1, 2, 1>, scalar_prefetch = 0 : i64, scratch_operands = 0 : i64, tpu.core_type = #tpu.core_type<tc>, window_params = [{transform_indices = @transform_0, window_bounds = array<i64: 1, 4, 256>}, {pipeline_mode = #tpu.pipeline_mode<synchronous>, transform_indices = @transform_1, window_bounds = array<i64: 8, 4>}, {pipeline_mode = #tpu.pipeline_mode<synchronous>, transform_indices = @transform_2, window_bounds = array<i64: 8, 1>}, {transform_indices = @transform_3, window_bounds = array<i64: 1, 8, 256>}]} {
    %c0 = arith.constant 0 : index
    %c0_0 = arith.constant 0 : index
    %0 = vector.load %arg4[%c0, %c0_0] : memref<8x4xbf16, #tpu.memory_space<vmem>>, vector<8x4xbf16>
    %c0_1 = arith.constant 0 : index
    %c0_2 = arith.constant 0 : index
    %c0_3 = arith.constant 0 : index
    %1 = vector.load %arg3[%c0_1, %c0_2, %c0_3] : memref<1x4x256xbf16, #tpu.memory_space<vmem>>, vector<1x4x256xbf16>
    %2 = vector.shape_cast %1 : vector<1x4x256xbf16> to vector<4x256xbf16>
    %cst = arith.constant dense<0.000000e+00> : vector<8x256xf32>
    %3 = tpu.matmul %0, %2, %cst {dimension_numbers = #tpu.dot_dimension_numbers<[1], [0], [0], [1], [0, 0, 1, 1], [], []>} : vector<8x4xbf16>, vector<4x256xbf16>, vector<8x256xf32> -> vector<8x256xf32>
    %c0_4 = arith.constant 0 : index
    %c0_5 = arith.constant 0 : index
    %4 = vector.load %arg5[%c0_4, %c0_5] : memref<8x1xf32, #tpu.memory_space<vmem>>, vector<8x1xf32>
    %5 = vector.broadcast %4 : vector<8x1xf32> to vector<8x256xf32>
    %6 = arith.addf %3, %5 : vector<8x256xf32>
    %c0_6 = arith.constant 0 : index
    %c0_7 = arith.constant 0 : index
    %c0_8 = arith.constant 0 : index
    %7 = vector.load %arg6[%c0_6, %c0_7, %c0_8] : memref<1x8x256xf32, #tpu.memory_space<vmem>>, vector<1x8x256xf32>
    %8 = vector.shape_cast %7 : vector<1x8x256xf32> to vector<8x256xf32>
    %9 = vector.shape_cast %6 : vector<8x256xf32> to vector<1x8x256xf32>
    tpu.vector_store %arg6[%c0_6, %c0_7, %c0_8], %9 {strides = array<i32>} : memref<1x8x256xf32, #tpu.memory_space<vmem>>, vector<1x8x256xf32>,
    return
  }
  func.func @transform_0(%arg0: i32, %arg1: i32, %arg2: i32) -> (i32, i32, i32) {
    %c0_i32 = arith.constant 0 : i32
    %c0_i32_0 = arith.constant 0 : i32
    return %arg1, %c0_i32, %arg2 : i32, i32, i32
  }
  func.func @transform_1(%arg0: i32, %arg1: i32, %arg2: i32) -> (i32, i32) {
    %c0_i32 = arith.constant 0 : i32
    %c0_i32_0 = arith.constant 0 : i32
    return %arg0, %c0_i32 : i32, i32
  }
  func.func @transform_2(%arg0: i32, %arg1: i32, %arg2: i32) -> (i32, i32) {
    %c0_i32 = arith.constant 0 : i32
    %c0_i32_0 = arith.constant 0 : i32
    return %arg0, %c0_i32 : i32, i32
  }
  func.func @transform_3(%arg0: i32, %arg1: i32, %arg2: i32) -> (i32, i32, i32) {
    %c0_i32 = arith.constant 0 : i32
    return %arg1, %arg0, %arg2 : i32, i32, i32
  }
}

</mosaic_0001>

<bundles_post_ra>
// kernel: tpu_custom_call.1
= control target key start
LH: loop header
LB: loop body
LE: loop exit
PB: predicated region body
PF: predicated region fallthrough
CT: control target
= control target key end

     0   :  { %8 = vsyncpa [#allocation3], 0  ;;  %s742_s0 = inlined_call_operand.vmem [shape: bf16[2,4,256], index: 0, kind: input, shape index: {}]   ;;  %s743_s1 = inlined_call_operand.vmem [shape: bf16[8,4], index: 1, kind: input, shape index: {}]   ;;  %s744_s2 = inlined_call_operand.vmem [shape: f32[8,1], index: 2, kind: input, shape index: {}]   ;;  %s745_s3 = inlined_call_operand.hbm [shape: f32[2,8,256], index: 3, kind: output, shape index: {}]  }
   0x1   :  { %10 = vsyncpa [#allocation3 + $0x1], 0  ;;  %s624_s12 = smov 0   ;;  %s626_s13 = smov 0  }
   0x2   :  { %s628_s14 = smov 0   ;;  %s630_s15 = smov 0  }
   0x3   :  { %s632_s16 = smov 0   ;;  %s634_s17 = smov 0  }
   0x4 LB: > { %s445_s18 = sadd.s32 4294967295, %s600_s17   ;;  %s446_s19 = sadd.s32 4294967294, %s600_s17   ;;  %s600_s17 = sphi %s634_s17, %s16_s17   ;;  %s596_s16 = sphi %s632_s16, %s752_s16   ;;  %s592_s15 = sphi %s630_s15, %s751_s15   ;;  %s588_s14 = sphi %s628_s14, %s750_s14   ;;  %s584_s13 = sphi %s626_s13, %s749_s13   ;;  %s580_s12 = sphi %s624_s12, %s748_s12  }
   0x5   : > { %s31_s20 = sadd.s32 1, %s596_s16  ;;  %s126_s21 = sadd.s32 1, %s588_s14 }
   0x6   : > { %p33_p0 = scmp.ge.s32.totalorder %s31_s20, 2  ;;  %p136_p1 = scmp.ne.s32.totalorder %s588_s14, %s584_s13 }
   0x7   : > { %p137_p2 = scmp.eq.s32.totalorder %s445_s18, 1  ;;  %p142_p3 = scmp.ne.s32.totalorder %s584_s13, %s580_s12 }
   0x8   : > { %s754_s20 = smov (%p33_p0, %s31_s20), 0  ;;  %p143_p5 = scmp.eq.s32.totalorder %s446_s19, 1 }
   0x9   : > { %p664_p4 = por %p137_p2, %p136_p1  ;;  %s119_s23 = ssub.s32 %s596_s16, %s754_s20 }
   0xa   : > { %p451_p6 = scmp.ge.s32.totalorder %s600_s17, 1  ;;  %p124_p7 = scmp.eq.s32.totalorder %s119_s23, 0 }
   0xb   : > { %p671_p8 = por %p143_p5, %p142_p3  ;;  %p188_p9 = scmp.lt.s32.totalorder %s600_s17, 3 }
   0xc   : > { %s677_s25 = scalar_select %p124_p7, %s588_s14, %s126_s21  }
   0xd   : > { %p189_p10 = pnand %p451_p6, %p188_p9 }
   0xe   : > { %p225_p11 = scmp.lt.s32.totalorder (!%p189_p10), %s592_s15, 1  ;;  %v602_v0 = vmov (!%p189_p10), 0   ;;  %v246_v1 = vld [vmem:[%s744_s2] sm:$0xff] (!%p189_p10)  ;;  %vm265_vm0 = vcmask (!%p189_p10), 1041408   ;;  %vm261_vm1 = vcmask (!%p189_p10), 31744   ;;  %s221_s8 = sand.u32 (!%p189_p10), 1, %s584_s13  }
   0xf   : > { %192 = sbr.rel (%p189_p10) target bundleno = 262 (0x106), region = 32  ;;  %304 = vmatprep.mubr.bf16.mxu0 (!%p189_p10), %v602_v0  ;;  %521 = vset.pattern.permute.xlu0 (!%p189_p10), %v602_v0  ;;  %v244_v5 = vld [vmem:[%s743_s1] sm:$0xf] (!%p189_p10)  ;;  %s452_s9 = sshll.u32 (!%p189_p10), %s221_s8, 4 }
  0x10   : > { %249 = vperm.xlu0 (!%p189_p10), %521, %v246_v1   ;;  %s464_s10 = sshll.u32 (!%p189_p10), %s592_s15, 8  ;;  %s223_s11 = scalar_lea.vmem (!%p189_p10), [#allocation2], %s452_s9 }
  0x11   : > { %s334_s18 = sshll.u32 (!%p189_p10), %s223_s11, 4  ;;  %s695_s23 = scalar_lea.hbm (!%p189_p10), %s745_s3, %s464_s10  ;;  %s697_s18 = int_to_ptr.vmem [resolvable:$true] %s334_s18 }
  0x12   : > { %s522_s26 = scalar_lea.vmem (!%p189_p10), %s697_s18, 256  ;;  %s603_s27 = smov (!%p189_p10), [#allocation2]  }
  0x13   : > { %p523_p12 = scmp.ne.s32.totalorder (!%p189_p10), %s697_s18, %s522_s26 }
  0x15   : > { %p524_p13 = pnand (!%p189_p10), %p523_p12, %p664_p4 }
  0x16   : > { %s226_s28 = scalar_select %p225_p11, %s592_s15, 1 }
  0x17   : > { %s316_s15 = scalar_lea.sflag [#allocation3], %s221_s8  ;;  %p525_p0 = pneg %p524_p13 }
  0x18   : > { %s463_s29 = sshll.u32 %s226_s28, 2  ;;  %s526_s28 = sshll.u32 %s603_s27, 4  ;;  %s527_s28 = int_to_ptr.vmem [resolvable:$false] %s526_s28 }
  0x19   : > { %s232_s5 = scalar_lea.vmem %s742_s0, %s463_s29  ;;  %s528_s29 = scalar_lea.vmem %s527_s28, 512 }
  0x1a   : > { %v455_v2 = vld.sshfl [vmem:[%s232_s5] sm:$0x33 pattern:$0x76325410]  ;;  %p529_p1 = scmp.lt.s32.totalorder %s697_s18, %s527_s28  ;;  %p530_p2 = scmp.lt.s32.totalorder %s528_s29, %s522_s26 }
  0x1b   : > { %v260_v3 = vcombine.high %v455_v2, %v455_v2  ;;  %v267_v4 = vsel %vm265_vm0, %v455_v2, 0 }
  0x1c   : > { %p531_p3 = por %p530_p2, %p529_p1 }
  0x1d   : > { %456 = vmatprep.subr.msk.bf16.mxu0 %vm265_vm0, %v260_v3 }
  0x1e   : > { %273 = vmatpush1.bf16.msra.mxu0 %v267_v4  ;;  %p532_p5 = pnand %p531_p3, %p525_p0 }
  0x21   : > { %457 = vmatmul.mubr.msk.bf16.vlgmr.msra.gmra.mrb[0].mxu0 %vm261_vm1, %v244_v5 }
  0x8f   : > { %v250_v6 = vpop.permute.xlu0 %249 }
  0xf4   : > { %v306_v7 = vpop.f32.mrb[0].mxu0 }
  0xf5   : > { %v307_v8 = vadd.f32 %v306_v7, %v250_v6  ;;  %v308_v9 = vpop.f32.mrb[1].mxu0 }
  0xf6   : > { %v309_v10 = vadd.f32 %v308_v9, %v250_v6  ;;  %v310_v11 = vpop.f32.mrb[2].mxu0 }
  0xf7   : > { %313 = vst [vmem:[%s223_s11] sm:$0xff] %v307_v8  ;;  %v311_v12 = vpop.f32.mrb[3].mxu0 }
  0xf8   : > { %314 = vst [vmem:[%s223_s11 + $0x8] sm:$0xff] %v309_v10 }
  0xf9   : > { %535 = shalt.err (!%p532_p5)
}
  0xfa   : > { %s536_s30 = scalar_lea.hbm %s695_s23, 256  ;;  %s540_s6 = scalar_lea.hbm %s745_s3, 512 }
  0xfb   : > { %p537_p6 = scmp.ne.s32.totalorder %s695_s23, %s536_s30  ;;  %p541_p10 = scmp.lt.u32.totalorder %s695_s23, %s745_s3 }
  0xfc   : > { %p542_p11 = scmp.lt.u32.totalorder %s540_s6, %s536_s30  ;;  %p544_p13 = scmp.lt.u32.totalorder %s536_s30, %s695_s23 }
  0xfd   : > { %p538_p7 = pnand %p537_p6, %p664_p4 }
  0xfe   : > { %p543_p12 = por %p542_p11, %p541_p10 }
  0xff   : > { %p539_p9 = pneg %p538_p7 }
 0x100   : > { %p545_p0 = por %p544_p13, %p543_p12 }
 0x102   : > { %p546_p1 = pnand %p545_p0, %p539_p9 }
 0x104   : > { %549 = shalt.err (!%p546_p1)
}
 0x105   : > { %465 = dma.vmem_to_hbm [thread:$0]  (%p664_p4), %s697_s18, 256, %s695_s23, %s316_s15  }
 0x106 PF: > { %p471_p2 = scmp.ge.s32.totalorder %s600_s17, 2  ;;  %s346_s9 = sand.u32 1, %s580_s12  }
 0x107   : > { %s347_s10 = scalar_lea.sflag [#allocation3], %s346_s9 }
 0x108   : > { %p468_p3 = pnand %p471_p2, %p671_p8 }
 0x10a   : > { %575 = dma.done.wait (!%p468_p3), %s347_s10, 256  }
 0x10b   : > { %577 = vsyncadd (!%p468_p3), %s347_s10, 4294967040  ;;  %s16_s17 = sadd.s32 1, %s600_s17   ;;  %s748_s12 = smov %s584_s13 }
 0x10c   : > { %p13_p5 = scmp.ge.s32.totalorder %s16_s17, 4   ;;  %s749_s13 = smov %s588_s14 }
 0x10d   : > { %s750_s14 = smov %s677_s25  ;;  %s751_s15 = smov %s596_s16 }
 0x10e   : > { %s752_s16 = smov %s754_s20  ;;  %15 = sbr.rel (!%p13_p5) target bundleno = 4 (0x4), region = 73 }
 0x115   :  { %352 = vsyncpa [#allocation3], 1 }
 0x116   :  { %354 = vsyncpa [#allocation3 + $0x1], 1 }

</bundles_post_ra>
